<compile_context>
chip_gen: v7x
topology: tpu7x:2x2x1
jax: 0.10.0
libtpu: 0.0.40
codegen_flags: <defaults>
</compile_context>

<pallas_src>
import functools

import jax
import jax.numpy as jnp
from jax.experimental import pallas as pl
from jax.experimental.pallas import tpu as pltpu


def _round_up(x, m):
    return (x + m - 1) // m * m


# ----------------------------- Pallas kernels -----------------------------

def _mm_kernel(a_ref, b_ref, o_ref, acc_ref):
    @pl.when(pl.program_id(2) == 0)
    def _():
        acc_ref[...] = jnp.zeros_like(acc_ref)

    acc_ref[...] += jnp.dot(a_ref[...], b_ref[...],
                            preferred_element_type=jnp.float32)

    @pl.when(pl.program_id(2) == pl.num_programs(2) - 1)
    def _():
        o_ref[...] = acc_ref[...].astype(o_ref.dtype)


def _mm_bias_kernel(a_ref, b_ref, bias_ref, o_ref, acc_ref):
    @pl.when(pl.program_id(2) == 0)
    def _():
        acc_ref[...] = jnp.zeros_like(acc_ref)

    acc_ref[...] += jnp.dot(a_ref[...], b_ref[...],
                            preferred_element_type=jnp.float32)

    @pl.when(pl.program_id(2) == pl.num_programs(2) - 1)
    def _():
        o_ref[...] = (acc_ref[...] + bias_ref[...]).astype(o_ref.dtype)


def pallas_matmul(a, b, bias=None, *, tm=256, tn=256, tk=256):
    """Tiled (M,K)@(K,N) [+ bias] on the MXU, bf16 in / f32 accumulate."""
    M, K = a.shape
    K2, N = b.shape
    assert K == K2
    tm = min(tm, _round_up(M, 8))
    tn = min(tn, _round_up(N, 128))
    tk = min(tk, _round_up(K, 128))
    Mp, Np, Kp = _round_up(M, tm), _round_up(N, tn), _round_up(K, tk)

    a_p = jnp.pad(a.astype(jnp.bfloat16), ((0, Mp - M), (0, Kp - K)))
    b_p = jnp.pad(b.astype(jnp.bfloat16), ((0, Kp - K), (0, Np - N)))

    grid = (Mp // tm, Np // tn, Kp // tk)
    a_spec = pl.BlockSpec((tm, tk), lambda i, j, k: (i, k))
    b_spec = pl.BlockSpec((tk, tn), lambda i, j, k: (k, j))
    out_spec = pl.BlockSpec((tm, tn), lambda i, j, k: (i, j))
    scratch = [pltpu.VMEM((tm, tn), jnp.float32)]
    cp = pltpu.CompilerParams(
        dimension_semantics=("parallel", "parallel", "arbitrary"))

    if bias is None:
        out = pl.pallas_call(
            _mm_kernel,
            out_shape=jax.ShapeDtypeStruct((Mp, Np), jnp.float32),
            grid=grid,
            in_specs=[a_spec, b_spec],
            out_specs=out_spec,
            scratch_shapes=scratch,
            compiler_params=cp,
        )(a_p, b_p)
    else:
        bias_p = jnp.pad(bias.reshape(1, N).astype(jnp.float32),
                         ((0, 0), (0, Np - N)))
        out = pl.pallas_call(
            _mm_bias_kernel,
            out_shape=jax.ShapeDtypeStruct((Mp, Np), jnp.float32),
            grid=grid,
            in_specs=[a_spec, b_spec,
                      pl.BlockSpec((1, tn), lambda i, j, k: (0, j))],
            out_specs=out_spec,
            scratch_shapes=scratch,
            compiler_params=cp,
        )(a_p, b_p, bias_p)
    return out[:M, :N]


def _bn_kernel(x_ref, g_ref, b_ref, o_ref, *, eps, relu):
    x = x_ref[...]
    mean = jnp.mean(x, axis=0, keepdims=True)
    var = jnp.mean((x - mean) ** 2, axis=0, keepdims=True)   # biased var (train mode)
    y = (x - mean) * jax.lax.rsqrt(var + eps) * g_ref[...] + b_ref[...]
    if relu:
        y = jnp.maximum(y, 0.0)
    o_ref[...] = y


def _bn_res_relu_kernel(x_ref, g_ref, b_ref, res_ref, o_ref, *, eps):
    x = x_ref[...]
    mean = jnp.mean(x, axis=0, keepdims=True)
    var = jnp.mean((x - mean) ** 2, axis=0, keepdims=True)
    y = (x - mean) * jax.lax.rsqrt(var + eps) * g_ref[...] + b_ref[...]
    o_ref[...] = jnp.maximum(y + res_ref[...], 0.0)


def batchnorm_act(x_nhwc, gamma, beta, residual=None, relu=False, eps=1e-5):
    """Fused train-mode BatchNorm (+ optional residual add) (+ optional ReLU)."""
    B, H, W, C = x_nhwc.shape
    R = B * H * W
    x2 = x_nhwc.reshape(R, C).astype(jnp.float32)
    g = gamma.reshape(1, C).astype(jnp.float32)
    b = beta.reshape(1, C).astype(jnp.float32)
    full = lambda i: (0, 0)
    if residual is None:
        y = pl.pallas_call(
            functools.partial(_bn_kernel, eps=eps, relu=relu),
            out_shape=jax.ShapeDtypeStruct((R, C), jnp.float32),
            grid=(1,),
            in_specs=[pl.BlockSpec((R, C), full),
                      pl.BlockSpec((1, C), full),
                      pl.BlockSpec((1, C), full)],
            out_specs=pl.BlockSpec((R, C), full),
        )(x2, g, b)
    else:
        res = residual.reshape(R, C).astype(jnp.float32)
        y = pl.pallas_call(
            functools.partial(_bn_res_relu_kernel, eps=eps),
            out_shape=jax.ShapeDtypeStruct((R, C), jnp.float32),
            grid=(1,),
            in_specs=[pl.BlockSpec((R, C), full),
                      pl.BlockSpec((1, C), full),
                      pl.BlockSpec((1, C), full),
                      pl.BlockSpec((R, C), full)],
            out_specs=pl.BlockSpec((R, C), full),
        )(x2, g, b, res)
    return y.reshape(B, H, W, C)


# ----------------------------- glue: conv / pool ---------------------------

def conv2d(x, w, stride, pad):
    """x:(B,H,W,Cin), w:(kh,kw,Cin,Cout) -> (B,Ho,Wo,Cout) via bf16 im2col +
    tiled Pallas MXU matmul."""
    kh, kw, cin, cout = w.shape
    B, H, W, C = x.shape
    assert C == cin
    Ho = (H + 2 * pad - kh) // stride + 1
    Wo = (W + 2 * pad - kw) // stride + 1
    xp = jnp.pad(x.astype(jnp.bfloat16),
                 ((0, 0), (pad, pad), (pad, pad), (0, 0)))
    cols = []
    for i in range(kh):
        for j in range(kw):
            cols.append(xp[:, i:i + stride * (Ho - 1) + 1:stride,
                           j:j + stride * (Wo - 1) + 1:stride, :])
    patches = jnp.concatenate(cols, axis=-1)                  # (B,Ho,Wo,kh*kw*Cin) bf16
    a = patches.reshape(B * Ho * Wo, kh * kw * cin)
    bmat = w.reshape(kh * kw * cin, cout)                     # ordering matches (i, j, ci)
    out = pallas_matmul(a, bmat)
    return out.reshape(B, Ho, Wo, cout)


def maxpool2d(x, ksize=3, stride=2, pad=1):
    # Running maximum over shifted views; XLA fuses this into one
    # memory-optimal elementwise pass (no 9x staging tensor, no extra launch).
    B, H, W, C = x.shape
    Ho = (H + 2 * pad - ksize) // stride + 1
    Wo = (W + 2 * pad - ksize) // stride + 1
    xp = jnp.pad(x, ((0, 0), (pad, pad), (pad, pad), (0, 0)),
                 constant_values=-jnp.inf)
    out = None
    for i in range(ksize):
        for j in range(ksize):
            win = xp[:, i:i + stride * (Ho - 1) + 1:stride,
                     j:j + stride * (Wo - 1) + 1:stride, :]
            out = win if out is None else jnp.maximum(out, win)
    return out


# ----------------------------- model pieces -------------------------------

def embedding_forward(x_nhwc, params):
    # empty_tensor in the reference is created but never used -> omitted.
    # 3x3, Cin=Cout=1 conv is far too small for the MXU: 9 shifted
    # multiply-adds on the VPU path instead.
    s = x_nhwc[..., 0:1] + x_nhwc[..., 1:2]                   # (B,H,W,1)
    w = params['emb_conv_w']                                   # (3,3,1,1)
    B, H, W, _ = s.shape
    sp = jnp.pad(s, ((0, 0), (1, 1), (1, 1), (0, 0)))
    conv = jnp.zeros_like(s)
    for i in range(3):
        for j in range(3):
            conv = conv + w[i, j, 0, 0] * sp[:, i:i + H, j:j + W, :]
    result = s + jax.nn.sigmoid(conv)
    return jnp.concatenate([x_nhwc, result], axis=-1)          # (B,H,W,3)


def basic_block(x, bp, stride):
    out = conv2d(x, bp['conv1_w'], stride=stride, pad=1)
    out = batchnorm_act(out, bp['bn1_g'], bp['bn1_b'], relu=True)
    out = conv2d(out, bp['conv2_w'], stride=1, pad=1)
    if 'ds_conv_w' in bp:
        identity = conv2d(x, bp['ds_conv_w'], stride=stride, pad=0)
        identity = batchnorm_act(identity, bp['ds_bn_g'], bp['ds_bn_b'], relu=False)
    else:
        identity = x
    # bn2 -> += identity -> relu  (fused)
    out = batchnorm_act(out, bp['bn2_g'], bp['bn2_b'], residual=identity, relu=True)
    return out


def resnet_forward(x5d, params):
    B = x5d.shape[0]
    H, W = x5d.shape[3], x5d.shape[4]
    x = x5d.reshape(B, -1, H, W)                 # x.view(B, -1, H, W)  (NCHW)
    x = jnp.transpose(x, (0, 2, 3, 1))           # -> NHWC
    x = embedding_forward(x, params)
    x = conv2d(x, params['conv1_w'], stride=2, pad=3)
    x = batchnorm_act(x, params['bn1_g'], params['bn1_b'], relu=True)
    x = maxpool2d(x, ksize=3, stride=2, pad=1)
    for lname, stride in (('layer1', 1), ('layer2', 2), ('layer3', 2), ('layer4', 2)):
        blocks = params[lname]
        x = basic_block(x, blocks[0], stride)
        for bp in blocks[1:]:
            x = basic_block(x, bp, 1)
    x = jnp.mean(x, axis=(1, 2))                 # adaptive avg pool to 1x1 (tiny reduction)
    logits = pallas_matmul(x, params['fc_w'], bias=params['fc_b'])
    return logits


# ----------------------------- parameter init -----------------------------

def init_params(key, layer_blocks=(2, 2, 2, 2), num_classes=1000):
    keys = iter(jax.random.split(key, 64))

    def conv_w(kh, kw, cin, cout):
        fan_in = kh * kw * cin
        return (jax.random.normal(next(keys), (kh, kw, cin, cout), jnp.float32)
                * jnp.sqrt(2.0 / fan_in))

    params = {
        'emb_conv_w': conv_w(3, 3, 1, 1),
        'conv1_w': conv_w(7, 7, 3, 64),
        'bn1_g': jnp.ones((64,), jnp.float32),
        'bn1_b': jnp.zeros((64,), jnp.float32),
    }
    in_ch = 64
    widths = (64, 128, 256, 512)
    strides = (1, 2, 2, 2)
    for li, (width, nblk, st) in enumerate(zip(widths, layer_blocks, strides), start=1):
        blks = []
        for b in range(nblk):
            stride = st if b == 0 else 1
            cin = in_ch if b == 0 else width
            bp = {
                'conv1_w': conv_w(3, 3, cin, width),
                'bn1_g': jnp.ones((width,), jnp.float32),
                'bn1_b': jnp.zeros((width,), jnp.float32),
                'conv2_w': conv_w(3, 3, width, width),
                'bn2_g': jnp.ones((width,), jnp.float32),
                'bn2_b': jnp.zeros((width,), jnp.float32),
            }
            if b == 0 and (stride != 1 or cin != width):
                bp['ds_conv_w'] = conv_w(1, 1, cin, width)
                bp['ds_bn_g'] = jnp.ones((width,), jnp.float32)
                bp['ds_bn_b'] = jnp.zeros((width,), jnp.float32)
            blks.append(bp)
        params[f'layer{li}'] = blks
        in_ch = width
    params['fc_w'] = (jax.random.normal(next(keys), (512, num_classes), jnp.float32)
                      * 0.02)
    params['fc_b'] = jnp.zeros((num_classes,), jnp.float32)
    return params


# ----------------------------- main ----------------------------------------

if __name__ == "__main__":
    key = jax.random.PRNGKey(0)
    pkey, xkey = jax.random.split(key)
    params = init_params(pkey)
    # 5-D input (B, C1, C2, H, W): view collapses dims 1,2 -> 2 channels.
    x = jax.random.normal(xkey, (2, 2, 1, 16, 16), jnp.float32)
    logits = resnet_forward(x, params)
    logits = jax.block_until_ready(logits)
    assert logits.shape == (2, 1000)
    assert bool(jnp.all(jnp.isfinite(logits)))
    print("KERNEL_OK")
</pallas_src>

<mosaic_0001>
module attributes {stable_mosaic.version = 11 : i64} {
  func.func @_mm_kernel(%arg0: i32, %arg1: i32, %arg2: i32, %arg3: memref<128x256xbf16, #tpu.memory_space<vmem>>, %arg4: memref<256x128xbf16, #tpu.memory_space<vmem>>, %arg5: memref<128x128xf32, #tpu.memory_space<vmem>>, %arg6: memref<128x128xf32, #tpu.memory_space<vmem>>) attributes {dimension_semantics = [#tpu.dimension_semantics<parallel>, #tpu.dimension_semantics<parallel>, #tpu.dimension_semantics<arbitrary>], iteration_bounds = array<i64: 1, 1, 1>, scalar_prefetch = 0 : i64, scratch_operands = 1 : i64, tpu.core_type = #tpu.core_type<tc>, window_params = [{transform_indices = @transform_0, window_bounds = array<i64: 128, 256>}, {transform_indices = @transform_1, window_bounds = array<i64: 256, 128>}, {transform_indices = @transform_2, window_bounds = array<i64: 128, 128>}]} {
    %c0_i32 = arith.constant 0 : i32
    %0 = arith.cmpi eq, %arg2, %c0_i32 : i32
    %1 = arith.extui %0 : i1 to i32
    %c0_i32_0 = arith.constant 0 : i32
    %2 = arith.cmpi ne, %1, %c0_i32_0 : i32
    scf.if %2 {
      %cst_10 = arith.constant 0.000000e+00 : f32
      %12 = vector.broadcast %cst_10 : f32 to vector<128x128xf32>
      %c0_11 = arith.constant 0 : index
      %c0_12 = arith.constant 0 : index
      %13 = vector.load %arg6[%c0_11, %c0_12] : memref<128x128xf32, #tpu.memory_space<vmem>>, vector<128x128xf32>
      tpu.vector_store %arg6[%c0_11, %c0_12], %12 {strides = array<i32>} : memref<128x128xf32, #tpu.memory_space<vmem>>, vector<128x128xf32>,
    } else {
    }
    %c0 = arith.constant 0 : index
    %c0_1 = arith.constant 0 : index
    %3 = vector.load %arg6[%c0, %c0_1] : memref<128x128xf32, #tpu.memory_space<vmem>>, vector<128x128xf32>
    %c0_2 = arith.constant 0 : index
    %c0_3 = arith.constant 0 : index
    %4 = vector.load %arg3[%c0_2, %c0_3] : memref<128x256xbf16, #tpu.memory_space<vmem>>, vector<128x256xbf16>
    %c0_4 = arith.constant 0 : index
    %c0_5 = arith.constant 0 : index
    %5 = vector.load %arg4[%c0_4, %c0_5] : memref<256x128xbf16, #tpu.memory_space<vmem>>, vector<256x128xbf16>
    %cst = arith.constant dense<0.000000e+00> : vector<128x128xf32>
    %6 = tpu.matmul %4, %5, %cst {dimension_numbers = #tpu.dot_dimension_numbers<[1], [0], [0], [1], [0, 0, 1, 1], [], []>} : vector<128x256xbf16>, vector<256x128xbf16>, vector<128x128xf32> -> vector<128x128xf32>
    %7 = arith.addf %3, %6 : vector<128x128xf32>
    %c0_6 = arith.constant 0 : index
    %c0_7 = arith.constant 0 : index
    %8 = vector.load %arg6[%c0_6, %c0_7] : memref<128x128xf32, #tpu.memory_space<vmem>>, vector<128x128xf32>
    tpu.vector_store %arg6[%c0_6, %c0_7], %7 {strides = array<i32>} : memref<128x128xf32, #tpu.memory_space<vmem>>, vector<128x128xf32>,
    %c0_i32_8 = arith.constant 0 : i32
    %9 = arith.cmpi eq, %arg2, %c0_i32_8 : i32
    %10 = arith.extui %9 : i1 to i32
    %c0_i32_9 = arith.constant 0 : i32
    %11 = arith.cmpi ne, %10, %c0_i32_9 : i32
    scf.if %11 {
      %c0_10 = arith.constant 0 : index
      %c0_11 = arith.constant 0 : index
      %12 = vector.load %arg6[%c0_10, %c0_11] : memref<128x128xf32, #tpu.memory_space<vmem>>, vector<128x128xf32>
      %c0_12 = arith.constant 0 : index
      %c0_13 = arith.constant 0 : index
      %13 = vector.load %arg5[%c0_12, %c0_13] : memref<128x128xf32, #tpu.memory_space<vmem>>, vector<128x128xf32>
      tpu.vector_store %arg5[%c0_12, %c0_13], %12 {strides = array<i32>} : memref<128x128xf32, #tpu.memory_space<vmem>>, vector<128x128xf32>,
    } else {
    }
    return
  }
  func.func @transform_0(%arg0: i32, %arg1: i32, %arg2: i32) -> (i32, i32) {
    %c0_i32 = arith.constant 0 : i32
    return %arg0, %arg2 : i32, i32
  }
  func.func @transform_1(%arg0: i32, %arg1: i32, %arg2: i32) -> (i32, i32) {
    %c0_i32 = arith.constant 0 : i32
    return %arg2, %arg1 : i32, i32
  }
  func.func @transform_2(%arg0: i32, %arg1: i32, %arg2: i32) -> (i32, i32) {
    %c0_i32 = arith.constant 0 : i32
    return %arg0, %arg1 : i32, i32
  }
}

</mosaic_0001>

<bundles_post_ra>
// kernel: tpu_custom_call.1
= control target key start
LH: loop header
LB: loop body
LE: loop exit
PB: predicated region body
PF: predicated region fallthrough
CT: control target
= control target key end

     0   :  { %7 = vsyncpa [#allocation4], 0  ;;  %s778_s0 = inlined_call_operand.hbm [shape: bf16[128,256], index: 0, kind: input, shape index: {}]   ;;  %s779_s1 = inlined_call_operand.hbm [shape: bf16[256,128], index: 1, kind: input, shape index: {}]   ;;  %s780_s2 = inlined_call_operand.hbm [shape: f32[128,128], index: 2, kind: output, shape index: {}]  }
   0x1   :  { %8 = vsyncpa [#allocation7], 0 }
   0x2   :  { %9 = vsyncpa [#allocation5], 0  ;;  %s714_s9 = smov [#allocation3]   ;;  %s642_s13 = scalar_lea.hbm %s778_s0, 2048 }
   0x3   :  { %s15_s10 = sshll.u32 %s714_s9, 4  ;;  %p643_p0 = scmp.ne.s32.totalorder %s778_s0, %s642_s13  ;;  %s16_s10 = int_to_ptr.vmem [resolvable:$true] %s15_s10 }
   0x4   :  { %p646_p1 = scmp.lt.u32.totalorder %s642_s13, %s778_s0 }
   0x6   :  { %p648_p2 = pnand %p646_p1, %p643_p0 }
   0x8   :  { %651 = shalt.err (!%p648_p2)
}
   0x9   :  { %s652_s18 = scalar_lea.vmem %s16_s10, 2048  ;;  %p657_p4 = scmp.lt.s32.totalorder %s16_s10, %s16_s10 }
   0xa   :  { %p653_p3 = scmp.ne.s32.totalorder %s16_s10, %s652_s18  ;;  %p658_p5 = scmp.lt.s32.totalorder %s652_s18, %s652_s18 }
   0xc   :  { %p659_p6 = por %p658_p5, %p657_p4 }
   0xe   :  { %p660_p7 = pnand %p659_p6, %p653_p3 }
  0x10   :  { %663 = shalt.err (!%p660_p7)
}
  0x11   :  { %s715_s19 = smov 128   ;;  %s716_s20 = smov 8  }
  0x12   :  { %21 = dma.hbm_to_vmem [thread:$0]  %s778_s0, 2048, %s16_s10, [#allocation4], %s715_s19, %s715_s19, %s716_s20  }
  0x13   :  { %s717_s23 = smov [#allocation6]   ;;  %s664_s27 = scalar_lea.hbm %s779_s1, 2048 }
  0x14   :  { %s27_s24 = sshll.u32 %s717_s23, 4  ;;  %p665_p8 = scmp.ne.s32.totalorder %s779_s1, %s664_s27  ;;  %s28_s24 = int_to_ptr.vmem [resolvable:$true] %s27_s24 }
  0x15   :  { %p668_p9 = scmp.lt.u32.totalorder %s664_s27, %s779_s1 }
  0x17   :  { %p670_p10 = pnand %p668_p9, %p665_p8 }
  0x19   :  { %673 = shalt.err (!%p670_p10)
}
  0x1a   :  { %s674_s4 = scalar_lea.vmem %s28_s24, 2048  ;;  %p679_p12 = scmp.lt.s32.totalorder %s28_s24, %s28_s24 }
  0x1b   :  { %p675_p11 = scmp.ne.s32.totalorder %s28_s24, %s674_s4  ;;  %p680_p13 = scmp.lt.s32.totalorder %s674_s4, %s674_s4 }
  0x1d   :  { %p681_p0 = por %p680_p13, %p679_p12 }
  0x1f   :  { %p682_p1 = pnand %p681_p0, %p675_p11 }
  0x21   :  { %685 = shalt.err (!%p682_p1)
}
  0x22   :  { %s718_s0 = smov 64   ;;  %s719_s5 = smov 4  }
  0x23   :  { %33 = dma.hbm_to_vmem [thread:$0]  %s779_s1, 2048, %s28_s24, [#allocation7], %s718_s0, %s718_s0, %s719_s5  }
  0x24   :  { %708 = dma.done.wait [#allocation4], 2048  }
  0x25   :  { %709 = vsyncadd [#allocation4], 4294965248 }
  0x26   :  { %710 = dma.done.wait [#allocation7], 2048  }
  0x27   :  { %711 = vsyncadd [#allocation7], 4294965248  ;;  %v602_v0 = vld [vmem:[#allocation6 + $0x40] sm:$0xff]   ;;  %v604_v2 = vld [vmem:[#allocation6 + $0x48] sm:$0xff]   ;;  %s720_s1 = smov [#allocation8]  }
  0x28   :  { %v603_v1 = vld [vmem:[#allocation6] sm:$0xff]   ;;  %515 = vmatprep.subr.bf16.mxu0 %v602_v0  ;;  %579 = vmatprep.subr.bf16.mxu1 %v602_v0  ;;  %v605_v3 = vld [vmem:[#allocation6 + $0x8] sm:$0xff]   ;;  %v606_v4 = vld [vmem:[#allocation6 + $0x50] sm:$0xff]   ;;  %s470_s8 = sshll.u32 %s720_s1, 4  ;;  %s471_s8 = int_to_ptr.vmem [resolvable:$true] %s470_s8 }
  0x29   :  { %516 = vmatpush3.bf16.msra.mxu0 %v603_v1  ;;  %587 = vmatpush3.bf16.msra.mxu1 %v603_v1  ;;  %v607_v5 = vld [vmem:[#allocation6 + $0x10] sm:$0xff]   ;;  %v608_v6 = vld [vmem:[#allocation6 + $0x58] sm:$0xff]   ;;  %v610_v8 = vld [vmem:[#allocation6 + $0x60] sm:$0xff]   ;;  %s686_s9 = scalar_lea.vmem %s471_s8, 2048  ;;  %p691_p3 = scmp.lt.s32.totalorder %s471_s8, %s471_s8 }
  0x2a   :  { %517 = vmatprep.subr.bf16.mxu0 %v604_v2  ;;  %580 = vmatprep.subr.bf16.mxu1 %v604_v2  ;;  %v609_v7 = vld [vmem:[#allocation6 + $0x18] sm:$0xff]   ;;  %v611_v9 = vld [vmem:[#allocation6 + $0x20] sm:$0xff]   ;;  %v612_v10 = vld [vmem:[#allocation6 + $0x68] sm:$0xff]   ;;  %p687_p2 = scmp.ne.s32.totalorder %s471_s8, %s686_s9  ;;  %p692_p4 = scmp.lt.s32.totalorder %s686_s9, %s686_s9 }
  0x2b   :  { %v620_v11 = vld [vmem:[#allocation3 + $0x4] ss:$8 sps:$4 sm:$0xff]   ;;  %v614_v14 = vld [vmem:[#allocation6 + $0x70] sm:$0xff]   ;;  %v616_v16 = vld [vmem:[#allocation6 + $0x78] sm:$0xff]  }
  0x2c   :  { %v623_v12 = vld [vmem:[#allocation3 + $0x44] ss:$8 sps:$4 sm:$0xff]   ;;  %333 = vmatprep.mubr.bf16.mxu0 %v620_v11  ;;  %v615_v15 = vld [vmem:[#allocation6 + $0x30] sm:$0xff]   ;;  %v617_v17 = vld [vmem:[#allocation6 + $0x38] sm:$0xff]   ;;  %p693_p5 = por %p692_p4, %p691_p3 }
  0x2d   :  { %518 = vmatpush3.bf16.msra.mxu0 %v605_v3  ;;  %588 = vmatpush3.bf16.msra.mxu1 %v605_v3  ;;  %v613_v13 = vld [vmem:[#allocation6 + $0x28] sm:$0xff]   ;;  %v624_v20 = vld [vmem:[#allocation3 + $0x14] ss:$8 sps:$4 sm:$0xff]   ;;  %v628_v22 = vld [vmem:[#allocation3 + $0x10] ss:$8 sps:$4 sm:$0xff]  }
  0x2e   :  { %519 = vmatprep.subr.bf16.mxu0 %v606_v4  ;;  %581 = vmatprep.subr.bf16.mxu1 %v606_v4  ;;  %v618_v18 = vld [vmem:[#allocation3] ss:$8 sps:$4 sm:$0xff]   ;;  %v626_v21 = vld [vmem:[#allocation3 + $0x54] ss:$8 sps:$4 sm:$0xff]   ;;  %v629_v23 = vld [vmem:[#allocation3 + $0x50] ss:$8 sps:$4 sm:$0xff]   ;;  %p694_p6 = pnand %p693_p5, %p687_p2 }
  0x2f   :  { %365 = vmatprep.mubr.bf16.mxu1 %v623_v12  ;;  %v621_v19 = vld [vmem:[#allocation3 + $0x40] ss:$8 sps:$4 sm:$0xff]   ;;  %v630_v24 = vld [vmem:[#allocation3 + $0x24] ss:$8 sps:$4 sm:$0xff]   ;;  %v636_v28 = vld [vmem:[#allocation3 + $0x34] ss:$8 sps:$4 sm:$0xff]  }
  0x30   :  { %v632_v25 = vld [vmem:[#allocation3 + $0x64] ss:$8 sps:$4 sm:$0xff]   ;;  %v634_v26 = vld [vmem:[#allocation3 + $0x20] ss:$8 sps:$4 sm:$0xff]   ;;  %v638_v29 = vld [vmem:[#allocation3 + $0x74] ss:$8 sps:$4 sm:$0xff]  }
  0x31   :  { %520 = vmatpush3.bf16.msra.mxu0 %v607_v5  ;;  %589 = vmatpush3.bf16.msra.mxu1 %v607_v5  ;;  %v635_v27 = vld [vmem:[#allocation3 + $0x60] ss:$8 sps:$4 sm:$0xff]   ;;  %v640_v30 = vld [vmem:[#allocation3 + $0x30] ss:$8 sps:$4 sm:$0xff]  }
  0x32   :  { %521 = vmatprep.subr.bf16.mxu0 %v608_v6  ;;  %582 = vmatprep.subr.bf16.mxu1 %v608_v6  ;;  %v641_v31 = vld [vmem:[#allocation3 + $0x70] ss:$8 sps:$4 sm:$0xff]  }
  0x35   :  { %522 = vmatpush3.bf16.msra.mxu0 %v609_v7  ;;  %590 = vmatpush3.bf16.msra.mxu1 %v609_v7 }
  0x36   :  { %523 = vmatprep.subr.bf16.mxu0 %v610_v8  ;;  %583 = vmatprep.subr.bf16.mxu1 %v610_v8 }
  0x39   :  { %524 = vmatpush3.bf16.msra.mxu0 %v611_v9  ;;  %591 = vmatpush3.bf16.msra.mxu1 %v611_v9 }
  0x3a   :  { %525 = vmatprep.subr.bf16.mxu0 %v612_v10  ;;  %584 = vmatprep.subr.bf16.mxu1 %v612_v10 }
  0x3d   :  { %526 = vmatpush3.bf16.msra.mxu0 %v613_v13  ;;  %592 = vmatpush3.bf16.msra.mxu1 %v613_v13 }
  0x3e   :  { %527 = vmatprep.subr.bf16.mxu0 %v614_v14  ;;  %585 = vmatprep.subr.bf16.mxu1 %v614_v14 }
  0x41   :  { %528 = vmatpush3.bf16.msra.mxu0 %v615_v15  ;;  %593 = vmatpush3.bf16.msra.mxu1 %v615_v15 }
  0x42   :  { %529 = vmatprep.subr.bf16.mxu0 %v616_v16  ;;  %586 = vmatprep.subr.bf16.mxu1 %v616_v16 }
  0x45   :  { %530 = vmatpush3.bf16.msra.mxu0 %v617_v17  ;;  %594 = vmatpush3.bf16.msra.mxu1 %v617_v17 }
  0x48   :  { %334 = vmatmul.mubr.bf16.vlgmr.msra.gmra.mrb[0].mxu0 %v618_v18  ;;  %366 = vmatmul.mubr.bf16.vlgmr.msra.gmra.mrb[0].mxu1 %v621_v19 }
  0x49   :  { %341 = vmatprep.mubr.bf16.mxu0 %v624_v20  ;;  %373 = vmatprep.mubr.bf16.mxu1 %v626_v21 }
  0x50   :  { %342 = vmatmul.mubr.bf16.gmra.mrb[4].mxu0 %v628_v22  ;;  %374 = vmatmul.mubr.bf16.gmra.mrb[4].mxu1 %v629_v23 }
  0x51   :  { %349 = vmatprep.mubr.bf16.mxu0 %v630_v24  ;;  %381 = vmatprep.mubr.bf16.mxu1 %v632_v25 }
  0x58   :  { %350 = vmatmul.mubr.bf16.gmra.mrb[8].mxu0 %v634_v26  ;;  %382 = vmatmul.mubr.bf16.gmra.mrb[8].mxu1 %v635_v27 }
  0x59   :  { %357 = vmatprep.mubr.bf16.mxu0 %v636_v28  ;;  %389 = vmatprep.mubr.bf16.mxu1 %v638_v29 }
  0x60   :  { %358 = vmatmul.mubr.bf16.gmra.mrb[12].mxu0 %v640_v30  ;;  %390 = vmatmul.mubr.bf16.gmra.mrb[12].mxu1 %v641_v31 }
 0x11b   :  { %v531_v32 = vpop.f32.mrb[0].mxu0  ;;  %v555_v33 = vpop.f32.mrb[0].mxu1 }
 0x11c   :  { %v532_v34 = vpop.f32.mrb[1].mxu0  ;;  %v556_v35 = vpop.f32.mrb[1].mxu1 }
 0x11d   :  { %v533_v36 = vadd.f32 %v532_v34, %v531_v32  ;;  %v557_v37 = vadd.f32 %v556_v35, %v555_v33  ;;  %v534_v38 = vpop.f32.mrb[2].mxu0  ;;  %v558_v39 = vpop.f32.mrb[2].mxu1 }
 0x11e   :  { %v535_v40 = vpop.f32.mrb[3].mxu0  ;;  %v559_v41 = vpop.f32.mrb[3].mxu1 }
 0x11f   :  { %449 = vst [vmem:[#allocation8] sm:$0xff] %v533_v36  ;;  %457 = vst [vmem:[#allocation8 + $0x40] sm:$0xff] %v557_v37  ;;  %v536_v42 = vadd.f32 %v535_v40, %v534_v38  ;;  %v560_v43 = vadd.f32 %v559_v41, %v558_v39 }
 0x121   :  { %450 = vst [vmem:[#allocation8 + $0x8] sm:$0xff] %v536_v42  ;;  %458 = vst [vmem:[#allocation8 + $0x48] sm:$0xff] %v560_v43 }
 0x123   :  { %v537_v44 = vpop.f32.mrb[4].mxu0  ;;  %v561_v45 = vpop.f32.mrb[4].mxu1 }
 0x124   :  { %v538_v46 = vpop.f32.mrb[5].mxu0  ;;  %v562_v47 = vpop.f32.mrb[5].mxu1 }
 0x125   :  { %v539_v48 = vadd.f32 %v538_v46, %v537_v44  ;;  %v563_v49 = vadd.f32 %v562_v47, %v561_v45  ;;  %v540_v50 = vpop.f32.mrb[6].mxu0  ;;  %v564_v51 = vpop.f32.mrb[6].mxu1 }
 0x126   :  { %v541_v52 = vpop.f32.mrb[7].mxu0  ;;  %v565_v53 = vpop.f32.mrb[7].mxu1 }
 0x127   :  { %451 = vst [vmem:[#allocation8 + $0x10] sm:$0xff] %v539_v48  ;;  %459 = vst [vmem:[#allocation8 + $0x50] sm:$0xff] %v563_v49  ;;  %v542_v54 = vadd.f32 %v541_v52, %v540_v50  ;;  %v566_v55 = vadd.f32 %v565_v53, %v564_v51 }
 0x129   :  { %452 = vst [vmem:[#allocation8 + $0x18] sm:$0xff] %v542_v54  ;;  %460 = vst [vmem:[#allocation8 + $0x58] sm:$0xff] %v566_v55 }
 0x12b   :  { %v543_v56 = vpop.f32.mrb[8].mxu0  ;;  %v567_v57 = vpop.f32.mrb[8].mxu1 }
 0x12c   :  { %v544_v58 = vpop.f32.mrb[9].mxu0  ;;  %v568_v59 = vpop.f32.mrb[9].mxu1 }
 0x12d   :  { %v545_v60 = vadd.f32 %v544_v58, %v543_v56  ;;  %v569_v61 = vadd.f32 %v568_v59, %v567_v57  ;;  %v546_v62 = vpop.f32.mrb[10].mxu0  ;;  %v570_v63 = vpop.f32.mrb[10].mxu1 }
 0x12e   :  { %v547_v0 = vpop.f32.mrb[11].mxu0  ;;  %v571_v1 = vpop.f32.mrb[11].mxu1 }
 0x12f   :  { %453 = vst [vmem:[#allocation8 + $0x20] sm:$0xff] %v545_v60  ;;  %461 = vst [vmem:[#allocation8 + $0x60] sm:$0xff] %v569_v61  ;;  %v548_v2 = vadd.f32 %v547_v0, %v546_v62  ;;  %v572_v3 = vadd.f32 %v571_v1, %v570_v63 }
 0x131   :  { %454 = vst [vmem:[#allocation8 + $0x28] sm:$0xff] %v548_v2  ;;  %462 = vst [vmem:[#allocation8 + $0x68] sm:$0xff] %v572_v3 }
 0x133   :  { %v549_v4 = vpop.f32.mrb[12].mxu0  ;;  %v573_v5 = vpop.f32.mrb[12].mxu1 }
 0x134   :  { %v550_v6 = vpop.f32.mrb[13].mxu0  ;;  %v574_v7 = vpop.f32.mrb[13].mxu1 }
 0x135   :  { %v551_v8 = vadd.f32 %v550_v6, %v549_v4  ;;  %v575_v9 = vadd.f32 %v574_v7, %v573_v5  ;;  %v552_v10 = vpop.f32.mrb[14].mxu0  ;;  %v576_v11 = vpop.f32.mrb[14].mxu1 }
 0x136   :  { %v553_v12 = vpop.f32.mrb[15].mxu0  ;;  %v577_v13 = vpop.f32.mrb[15].mxu1 }
 0x137   :  { %455 = vst [vmem:[#allocation8 + $0x30] sm:$0xff] %v551_v8  ;;  %463 = vst [vmem:[#allocation8 + $0x70] sm:$0xff] %v575_v9  ;;  %v554_v14 = vadd.f32 %v553_v12, %v552_v10  ;;  %v578_v15 = vadd.f32 %v577_v13, %v576_v11 }
 0x139   :  { %456 = vst [vmem:[#allocation8 + $0x38] sm:$0xff] %v554_v14  ;;  %464 = vst [vmem:[#allocation8 + $0x78] sm:$0xff] %v578_v15 }
 0x13a   :  { %697 = shalt.err (!%p694_p6)
}
 0x13b   :  { %s698_s12 = scalar_lea.hbm %s780_s2, 2048 }
 0x13c   :  { %p699_p7 = scmp.ne.s32.totalorder %s780_s2, %s698_s12  ;;  %p702_p8 = scmp.lt.u32.totalorder %s698_s12, %s780_s2 }
 0x13e   :  { %p704_p9 = pnand %p702_p8, %p699_p7 }
 0x140   :  { %707 = shalt.err (!%p704_p9)
}
 0x141   :  { %476 = dma.vmem_to_hbm [thread:$0]  %s471_s8, 2048, %s780_s2, [#allocation5], %s715_s19, %s715_s19, %s716_s20  }
 0x142   :  { %712 = dma.done.wait [#allocation5], 2048  }
 0x143   :  { %713 = vsyncadd [#allocation5], 4294965248 }
 0x144   :  { %480 = vsyncpa [#allocation4], 1 }
 0x145   :  { %481 = vsyncpa [#allocation7], 1 }
 0x146   :  { %482 = vsyncpa [#allocation5], 1 }

</bundles_post_ra>
